<compile_context>
chip_gen: v6e
topology: v6e:2x2x1
jax: 0.10.0
libtpu: 0.0.40
codegen_flags: <defaults>
</compile_context>

<pallas_src>
import jax
import jax.numpy as jnp
from jax.experimental import pallas as pl
from jax.experimental.pallas import tpu as pltpu


LEAKY_SLOPE = 0.01  # PyTorch nn.LeakyReLU default negative_slope


def _leaky_relu(x):
    return jnp.where(x > 0, x, LEAKY_SLOPE * x)


def _round_up(x, m):
    return ((x + m - 1) // m) * m


def _choose_tile(n, requested):
    """Batch tile: a multiple of 128 (lane-dense transposed output block, sublane-aligned
    x block), capped so the grid keeps >= 2 steps when the batch allows (v7x megacore)."""
    t = max(128, (int(requested) // 128) * 128)
    if n > 128:
        half = _round_up((n + 1) // 2, 128)
        t = min(t, half)
    else:
        t = 128
    return t


def mlp2_kernel(x_ref, w1_ref, b1_ref, w2_ref, b2_ref, w3t_ref, b3t_ref, ot_ref):
    # Entire 3-layer MLP fused.  Matmuls accumulate in f32 on the MXU; bias add and
    # LeakyReLU stay in f32 on the VPU regardless of the storage dtype (bf16-safe on v5e).
    w_dtype = w1_ref.dtype
    x = x_ref[...].astype(w_dtype)

    h1 = jnp.dot(x, w1_ref[...], preferred_element_type=jnp.float32) + b1_ref[...]
    h1 = _leaky_relu(h1).astype(w_dtype)

    h2 = jnp.dot(h1, w2_ref[...], preferred_element_type=jnp.float32) + b2_ref[...]
    h2 = _leaky_relu(h2).astype(w_dtype)

    # Final layer produced transposed: (d_out, tile_b).  tile_b is a multiple of 128,
    # so the store below is a full-width, unmasked lane-dense store.
    out_t = jax.lax.dot_general(
        w3t_ref[...], h2,
        dimension_numbers=(((1,), (1,)), ((), ())),
        preferred_element_type=jnp.float32,
    ) + b3t_ref[...]

    ot_ref[...] = out_t.astype(ot_ref.dtype)


def mlp2_forward(x, params, *, tile_b=512, compute_dtype=None):
    """x: [N, inputShape].  params: dict of transposed weights/biases (see init below).

    compute_dtype: optionally jnp.bfloat16 to halve HBM traffic for x and the weights
    (accumulation stays f32 in-kernel).  Output dtype always matches x's original dtype.
    """
    n, d_in = x.shape
    w1, b1 = params["w1"], params["b1"]
    w2, b2 = params["w2"], params["b2"]
    w3, b3 = params["w3"], params["b3"]
    d_lat = w1.shape[1]
    d_out = w3.shape[1]
    out_dtype = x.dtype

    if compute_dtype is not None:
        x = x.astype(compute_dtype)
        w1 = w1.astype(compute_dtype)
        w2 = w2.astype(compute_dtype)
        w3 = w3.astype(compute_dtype)

    # Biases stay f32 (cheap VPU math, hidden under the HBM-bound DMA).
    b1 = b1.reshape(1, d_lat).astype(jnp.float32)
    b2 = b2.reshape(1, d_lat).astype(jnp.float32)
    # Layer 3 presented transposed so the kernel writes a lane-dense (d_out, tile_b) slab.
    w3t = w3.T                                   # (d_out, d_lat) — one-time layout plumbing
    b3t = b3.reshape(d_out, 1).astype(jnp.float32)

    tile_b = _choose_tile(n, tile_b)
    n_pad = _round_up(n, tile_b)
    if n_pad != n:
        x = jnp.pad(x, ((0, n_pad - n), (0, 0)))  # padded rows computed then sliced off
    grid = (n_pad // tile_b,)

    # Explicit VMEM budget: 2x (x tile + out tile) double-buffered + single-buffered params.
    itm = jnp.dtype(x.dtype).itemsize
    vmem_bytes = (
        2 * tile_b * d_in * itm                              # x tile, double-buffered
        + 2 * d_out * tile_b * jnp.dtype(out_dtype).itemsize  # out tile, double-buffered
        + (d_in * d_lat + d_lat * d_lat + d_out * d_lat) * itm  # weights, single-buffered
        + (2 * d_lat + d_out) * 4                             # f32 biases
    )
    vmem_limit = int(min(64 << 20, max(16 << 20, 2 * vmem_bytes + (8 << 20))))

    # Constant operands: fetched once, keep a single VMEM buffer (no double buffering).
    def const(shape):
        return pl.BlockSpec(shape, lambda i: (0, 0),
                            pipeline_mode=pl.Buffered(buffer_count=1))

    out_t = pl.pallas_call(
        mlp2_kernel,
        out_shape=jax.ShapeDtypeStruct((d_out, n_pad), out_dtype),
        grid_spec=pltpu.PrefetchScalarGridSpec(
            num_scalar_prefetch=0,
            grid=grid,
            in_specs=[
                pl.BlockSpec((tile_b, d_in), lambda i: (i, 0)),  # x tile (pipelined, 2 bufs)
                const((d_in, d_lat)),      # W1^T  [in, lat]
                const((1, d_lat)),         # b1
                const((d_lat, d_lat)),     # W2^T  [lat, lat]
                const((1, d_lat)),         # b2
                const((d_out, d_lat)),     # W3    [out, lat]  (transposed-output layer)
                const((d_out, 1)),         # b3    [out, 1]
            ],
            out_specs=pl.BlockSpec((d_out, tile_b), lambda i: (0, i)),
        ),
        compiler_params=pltpu.CompilerParams(
            dimension_semantics=("parallel",),   # batch-parallel: megacore-shardable
            vmem_limit_bytes=vmem_limit,
        ),
    )(x, w1, b1, w2, b2, w3t, b3t)

    # (d_out, n_pad) -> (n, d_out): transpose + drop padded rows (plain XLA, tiny).
    return out_t.T[:n]


def init_mlp2_params(key, input_shape, latent_shape, output_shape):
    """Kaiming-normal (leaky_relu gain) weights, zero biases — matches init_weights()."""
    gain = (2.0 / (1.0 + LEAKY_SLOPE ** 2)) ** 0.5

    def kaiming(k, fan_in, fan_out):
        std = gain / (fan_in ** 0.5)
        # Stored transposed: [fan_in, fan_out] so the kernel computes x @ W.
        return std * jax.random.normal(k, (fan_in, fan_out), dtype=jnp.float32)

    k1, k2, k3 = jax.random.split(key, 3)
    return {
        "w1": kaiming(k1, input_shape, latent_shape),
        "b1": jnp.zeros((1, latent_shape), jnp.float32),
        "w2": kaiming(k2, latent_shape, latent_shape),
        "b2": jnp.zeros((1, latent_shape), jnp.float32),
        "w3": kaiming(k3, latent_shape, output_shape),
        "b3": jnp.zeros((1, output_shape), jnp.float32),
    }


def mlp2_reference(x, p):
    """Plain-JAX reference of the same forward pass for correctness checks."""
    h = _leaky_relu(x @ p["w1"] + p["b1"])
    h = _leaky_relu(h @ p["w2"] + p["b2"])
    return h @ p["w3"] + p["b3"]


if __name__ == "__main__":
    INPUT, LATENT, OUTPUT = 16, 32, 8
    BATCH = 200  # deliberately NOT a multiple of the tile: exercises cdiv + padding path

    key = jax.random.PRNGKey(0)
    kx, kp = jax.random.split(key)

    x = jax.random.normal(kx, (BATCH, INPUT), dtype=jnp.float32)
    params = init_mlp2_params(kp, INPUT, LATENT, OUTPUT)

    ref = mlp2_reference(x, params)

    # f32 path (tile rounds down to 128 here -> grid of 2 parallel steps).
    out = jax.block_until_ready(mlp2_forward(x, params, tile_b=512))
    assert out.shape == (BATCH, OUTPUT)
    assert jnp.allclose(out, ref, atol=1e-4, rtol=1e-4), "f32 Pallas output mismatch vs reference"

    # Optional bf16-storage path (bandwidth optimization; f32 accumulation in-kernel).
    out_bf16 = jax.block_until_ready(
        mlp2_forward(x, params, tile_b=512, compute_dtype=jnp.bfloat16))
    assert out_bf16.shape == (BATCH, OUTPUT)
    assert jnp.allclose(out_bf16, ref, atol=2.5e-1, rtol=5e-2), \
        "bf16 Pallas output mismatch vs reference"

    print("KERNEL_OK")
</pallas_src>

<mosaic_0001>
module attributes {stable_mosaic.version = 11 : i64} {
  func.func @mlp2_kernel(%arg0: i32, %arg1: memref<128x16xf32, #tpu.memory_space<vmem>>, %arg2: memref<16x32xf32, #tpu.memory_space<vmem>>, %arg3: memref<1x32xf32, #tpu.memory_space<vmem>>, %arg4: memref<32x32xf32, #tpu.memory_space<vmem>>, %arg5: memref<1x32xf32, #tpu.memory_space<vmem>>, %arg6: memref<8x32xf32, #tpu.memory_space<vmem>>, %arg7: memref<8x1xf32, #tpu.memory_space<vmem>>, %arg8: memref<8x128xf32, #tpu.memory_space<vmem>>) attributes {dimension_semantics = [#tpu.dimension_semantics<parallel>], iteration_bounds = array<i64: 2>, scalar_prefetch = 0 : i64, scratch_operands = 0 : i64, tpu.core_type = #tpu.core_type<tc>, window_params = [{transform_indices = @transform_0, window_bounds = array<i64: 128, 16>}, {pipeline_mode = #tpu.pipeline_mode<synchronous>, transform_indices = @transform_1, window_bounds = array<i64: 16, 32>}, {pipeline_mode = #tpu.pipeline_mode<synchronous>, transform_indices = @transform_2, window_bounds = array<i64: 1, 32>}, {pipeline_mode = #tpu.pipeline_mode<synchronous>, transform_indices = @transform_3, window_bounds = array<i64: 32, 32>}, {pipeline_mode = #tpu.pipeline_mode<synchronous>, transform_indices = @transform_4, window_bounds = array<i64: 1, 32>}, {pipeline_mode = #tpu.pipeline_mode<synchronous>, transform_indices = @transform_5, window_bounds = array<i64: 8, 32>}, {pipeline_mode = #tpu.pipeline_mode<synchronous>, transform_indices = @transform_6, window_bounds = array<i64: 8, 1>}, {transform_indices = @transform_7, window_bounds = array<i64: 8, 128>}]} {
    %c0 = arith.constant 0 : index
    %c0_0 = arith.constant 0 : index
    %0 = vector.load %arg1[%c0, %c0_0] : memref<128x16xf32, #tpu.memory_space<vmem>>, vector<128x16xf32>
    %c0_1 = arith.constant 0 : index
    %c0_2 = arith.constant 0 : index
    %1 = vector.load %arg2[%c0_1, %c0_2] : memref<16x32xf32, #tpu.memory_space<vmem>>, vector<16x32xf32>
    %cst = arith.constant dense<0.000000e+00> : vector<128x32xf32>
    %2 = tpu.matmul %0, %1, %cst {dimension_numbers = #tpu.dot_dimension_numbers<[1], [0], [0], [1], [0, 0, 1, 1], [], []>} : vector<128x16xf32>, vector<16x32xf32>, vector<128x32xf32> -> vector<128x32xf32>
    %c0_3 = arith.constant 0 : index
    %c0_4 = arith.constant 0 : index
    %3 = vector.load %arg3[%c0_3, %c0_4] : memref<1x32xf32, #tpu.memory_space<vmem>>, vector<1x32xf32>
    %4 = vector.broadcast %3 : vector<1x32xf32> to vector<128x32xf32>
    %5 = arith.addf %2, %4 : vector<128x32xf32>
    %cst_5 = arith.constant 0.000000e+00 : f32
    %6 = vector.broadcast %cst_5 : f32 to vector<128x32xf32>
    %7 = arith.cmpf ogt, %5, %6 : vector<128x32xf32>
    %cst_6 = arith.constant 0.00999999977 : f32
    %8 = vector.broadcast %cst_6 : f32 to vector<128x32xf32>
    %9 = arith.mulf %8, %5 : vector<128x32xf32>
    %10 = arith.select %7, %5, %9 : vector<128x32xi1>, vector<128x32xf32>
    %c0_7 = arith.constant 0 : index
    %c0_8 = arith.constant 0 : index
    %11 = vector.load %arg4[%c0_7, %c0_8] : memref<32x32xf32, #tpu.memory_space<vmem>>, vector<32x32xf32>
    %cst_9 = arith.constant dense<0.000000e+00> : vector<128x32xf32>
    %12 = tpu.matmul %10, %11, %cst_9 {dimension_numbers = #tpu.dot_dimension_numbers<[1], [0], [0], [1], [0, 0, 1, 1], [], []>} : vector<128x32xf32>, vector<32x32xf32>, vector<128x32xf32> -> vector<128x32xf32>
    %c0_10 = arith.constant 0 : index
    %c0_11 = arith.constant 0 : index
    %13 = vector.load %arg5[%c0_10, %c0_11] : memref<1x32xf32, #tpu.memory_space<vmem>>, vector<1x32xf32>
    %14 = vector.broadcast %13 : vector<1x32xf32> to vector<128x32xf32>
    %15 = arith.addf %12, %14 : vector<128x32xf32>
    %cst_12 = arith.constant 0.000000e+00 : f32
    %16 = vector.broadcast %cst_12 : f32 to vector<128x32xf32>
    %17 = arith.cmpf ogt, %15, %16 : vector<128x32xf32>
    %cst_13 = arith.constant 0.00999999977 : f32
    %18 = vector.broadcast %cst_13 : f32 to vector<128x32xf32>
    %19 = arith.mulf %18, %15 : vector<128x32xf32>
    %20 = arith.select %17, %15, %19 : vector<128x32xi1>, vector<128x32xf32>
    %c0_14 = arith.constant 0 : index
    %c0_15 = arith.constant 0 : index
    %21 = vector.load %arg6[%c0_14, %c0_15] : memref<8x32xf32, #tpu.memory_space<vmem>>, vector<8x32xf32>
    %cst_16 = arith.constant dense<0.000000e+00> : vector<8x128xf32>
    %22 = tpu.matmul %21, %20, %cst_16 {dimension_numbers = #tpu.dot_dimension_numbers<[1], [1], [0], [0], [0, 0, 1, 0], [], []>} : vector<8x32xf32>, vector<128x32xf32>, vector<8x128xf32> -> vector<8x128xf32>
    %c0_17 = arith.constant 0 : index
    %c0_18 = arith.constant 0 : index
    %23 = vector.load %arg7[%c0_17, %c0_18] : memref<8x1xf32, #tpu.memory_space<vmem>>, vector<8x1xf32>
    %24 = vector.broadcast %23 : vector<8x1xf32> to vector<8x128xf32>
    %25 = arith.addf %22, %24 : vector<8x128xf32>
    %c0_19 = arith.constant 0 : index
    %c0_20 = arith.constant 0 : index
    %26 = vector.load %arg8[%c0_19, %c0_20] : memref<8x128xf32, #tpu.memory_space<vmem>>, vector<8x128xf32>
    tpu.vector_store %arg8[%c0_19, %c0_20], %25 {strides = array<i32>} : memref<8x128xf32, #tpu.memory_space<vmem>>, vector<8x128xf32>,
    return
  }
  func.func @transform_0(%arg0: i32) -> (i32, i32) {
    %c0_i32 = arith.constant 0 : i32
    %c0_i32_0 = arith.constant 0 : i32
    return %arg0, %c0_i32 : i32, i32
  }
  func.func @transform_1(%arg0: i32) -> (i32, i32) {
    %c0_i32 = arith.constant 0 : i32
    %c0_i32_0 = arith.constant 0 : i32
    %c0_i32_1 = arith.constant 0 : i32
    return %c0_i32, %c0_i32_0 : i32, i32
  }
  func.func @transform_2(%arg0: i32) -> (i32, i32) {
    %c0_i32 = arith.constant 0 : i32
    %c0_i32_0 = arith.constant 0 : i32
    %c0_i32_1 = arith.constant 0 : i32
    return %c0_i32, %c0_i32_0 : i32, i32
  }
  func.func @transform_3(%arg0: i32) -> (i32, i32) {
    %c0_i32 = arith.constant 0 : i32
    %c0_i32_0 = arith.constant 0 : i32
    %c0_i32_1 = arith.constant 0 : i32
    return %c0_i32, %c0_i32_0 : i32, i32
  }
  func.func @transform_4(%arg0: i32) -> (i32, i32) {
    %c0_i32 = arith.constant 0 : i32
    %c0_i32_0 = arith.constant 0 : i32
    %c0_i32_1 = arith.constant 0 : i32
    return %c0_i32, %c0_i32_0 : i32, i32
  }
  func.func @transform_5(%arg0: i32) -> (i32, i32) {
    %c0_i32 = arith.constant 0 : i32
    %c0_i32_0 = arith.constant 0 : i32
    %c0_i32_1 = arith.constant 0 : i32
    return %c0_i32, %c0_i32_0 : i32, i32
  }
  func.func @transform_6(%arg0: i32) -> (i32, i32) {
    %c0_i32 = arith.constant 0 : i32
    %c0_i32_0 = arith.constant 0 : i32
    %c0_i32_1 = arith.constant 0 : i32
    return %c0_i32, %c0_i32_0 : i32, i32
  }
  func.func @transform_7(%arg0: i32) -> (i32, i32) {
    %c0_i32 = arith.constant 0 : i32
    %c0_i32_0 = arith.constant 0 : i32
    return %c0_i32, %arg0 : i32, i32
  }
}

</mosaic_0001>

<bundles_post_ra>
// kernel: tpu_custom_call.1
= control target key start
LH: loop header
LB: loop body
LE: loop exit
PB: predicated region body
PF: predicated region fallthrough
CT: control target
= control target key end

     0   :  { %12 = vsyncpa [#allocation3], 0  ;;  %s1622_s0 = inlined_call_operand.vmem [shape: f32[256,16], index: 0, kind: input, shape index: {}]   ;;  %s1623_s1 = inlined_call_operand.vmem [shape: f32[16,32], index: 1, kind: input, shape index: {}]   ;;  %s1624_s2 = inlined_call_operand.vmem [shape: f32[1,32], index: 2, kind: input, shape index: {}]   ;;  %s1625_s3 = inlined_call_operand.vmem [shape: f32[32,32], index: 3, kind: input, shape index: {}]   ;;  %s1626_s4 = inlined_call_operand.vmem [shape: f32[1,32], index: 4, kind: input, shape index: {}]   ;;  %s1627_s5 = inlined_call_operand.vmem [shape: f32[8,32], index: 5, kind: input, shape index: {}]   ;;  %s1628_s6 = inlined_call_operand.vmem [shape: f32[8,1], index: 6, kind: input, shape index: {}]   ;;  %s1629_s7 = inlined_call_operand.hbm [shape: f32[8,256], index: 7, kind: output, shape index: {}]  }
   0x1   :  { %14 = vsyncpa [#allocation3 + $0x1], 0  ;;  %s1362_s24 = smov 0   ;;  %s1364_s25 = smov 0  }
   0x2   :  { %s1366_s26 = smov 0   ;;  %s1368_s27 = smov 0  }
   0x3 LB: > { %s1383_s28 = sadd.s32 4294967295, %s1316_s27   ;;  %s1001_s29 = sadd.s32 4294967294, %s1316_s27   ;;  %s1316_s27 = sphi %s1368_s27, %s1635_s27   ;;  %s1312_s26 = sphi %s1366_s26, %s1634_s26   ;;  %s1308_s25 = sphi %s1364_s25, %s1633_s25   ;;  %s1304_s24 = sphi %s1362_s24, %s1632_s24  }
   0x4   : > { %s1387_s30 = sadd.s32 1, %s1316_s27   ;;  %s179_s8 = sadd.s32 1, %s1312_s26 }
   0x5   : > { %s176_s9 = ssub.s32 %s1316_s27, %s1387_s30  ;;  %p189_p0 = scmp.ne.s32.totalorder %s1312_s26, %s1308_s25 }
   0x6   : > { %p177_p1 = scmp.eq.s32.totalorder %s176_s9, 0  ;;  %p190_p2 = scmp.eq.s32.totalorder %s1383_s28, 1 }
   0x7   : > { %p195_p3 = scmp.ne.s32.totalorder %s1308_s25, %s1304_s24  ;;  %p196_p4 = scmp.eq.s32.totalorder %s1001_s29, 1 }
   0x8   : > { %s1398_s10 = scalar_select %p177_p1, %s1312_s26, %s179_s8  }
   0x9   : > { %p1400_p5 = por %p190_p2, %p189_p0  ;;  %p1404_p6 = por %p196_p4, %p195_p3 }
   0xa   : > { %p1004_p7 = scmp.ge.s32.totalorder %s1316_s27, 1  ;;  %p241_p8 = scmp.lt.s32.totalorder %s1316_s27, 3 }
   0xc   : > { %p242_p9 = pnand %p1004_p7, %p241_p8 }
   0xd   : > { %s1006_s17 = sshll.u32 (!%p242_p9), %s1383_s28, 4  ;;  %s270_s29 = sand.u32 (!%p242_p9), 1, %s1308_s25  }
   0xe   : > { %245 = sbr.rel (%p242_p9) target bundleno = 722 (0x2d2), region = 48  ;;  %p274_p10 = scmp.lt.s32.totalorder (!%p242_p9), %s1006_s17, 31 }
   0xf   : > { %s1005_s8 = sshll.u32 (!%p242_p9), %s270_s29, 3  ;;  %s1060_s9 = sshll.u32 (!%p242_p9), %s1383_s28, 7 }
  0x10   : > { %s272_s13 = scalar_lea.vmem (!%p242_p9), [#allocation2], %s1005_s8  ;;  %s929_s18 = scalar_lea.sflag (!%p242_p9), [#allocation3], %s270_s29 }
  0x11   : > { %s942_s14 = sshll.u32 (!%p242_p9), %s272_s13, 4  ;;  %s943_s14 = int_to_ptr.vmem [resolvable:$true] %s942_s14 }
  0x12   : > { %s1256_s19 = scalar_lea.vmem (!%p242_p9), %s943_s14, 128 }
  0x13   : > { %v296_v0 = vld [vmem:[%s1623_s1 + $0x8] sm:$0xff]  ;;  %v295_v1 = vld [vmem:[%s1623_s1] sm:$0xff]  ;;  %v549_v2 = vld [vmem:[%s1625_s3 + $0x18] sm:$0xff]  ;;  %s1637_s17 = smov (!%p274_p10, %s1006_s17), 31  ;;  %vm304_vm0 = vcmask 130048   ;;  %vm557_vm1 = vcmask 261120   ;;  %p1257_p11 = scmp.ne.s32.totalorder %s943_s14, %s1256_s19 }
  0x14   : > { %1118 = vmatprep.subr.mxu1 %v296_v0  ;;  %s1007_s20 = sshll.u32 %s1637_s17, 3  ;;  %v548_v6 = vld [vmem:[%s1625_s3 + $0x10] sm:$0xff]  ;;  %v547_v8 = vld [vmem:[%s1625_s3 + $0x8] sm:$0xff]  ;;  %v546_v21 = vld [vmem:[%s1625_s3] sm:$0xff]  ;;  %s1587_s17 = scalar_lea.hbm %s1629_s7, %s1060_s9 }
  0x15   : > { %1119 = vmatpush3.msra.mxu1 %v296_v0  ;;  %s1423_s23 = scalar_lea.vmem %s1622_s0, %s1007_s20  ;;  %v1469_v22 = vld [vmem:[%s1624_s2] ss:$0 sm:$0xff]  ;;  %p1258_p12 = pnand %p1257_p11, %p1400_p5 }
  0x16   : > { %1120 = vmatprep.subr.mxu1 %v295_v1  ;;  %v279_v3 = vld [vmem:[%s1423_s23] sm:$0xff]  ;;  %v280_v4 = vld [vmem:[%s1423_s23 + $0x8] sm:$0xff]  ;;  %v281_v5 = vld [vmem:[%s1423_s23 + $0x10] sm:$0xff]  ;;  %s1321_s20 = smov [#allocation2]  }
  0x17   : > { %1121 = vmatpush3.msra.mxu1 %v295_v1  ;;  %1122 = vmatprep.mubr.msk.f32.mxu1 %vm304_vm0, %v279_v3  ;;  %v282_v7 = vld [vmem:[%s1423_s23 + $0x18] sm:$0xff]  ;;  %v283_v9 = vld [vmem:[%s1423_s23 + $0x20] sm:$0xff]  ;;  %v284_v10 = vld [vmem:[%s1423_s23 + $0x28] sm:$0xff]  ;;  %p1259_p13 = pneg %p1258_p12  ;;  %s1260_s28 = sshll.u32 %s1321_s20, 4  ;;  %s1261_s28 = int_to_ptr.vmem [resolvable:$false] %s1260_s28 }
  0x18   : > { %1146 = vmatprep.subr.mxu1 %v549_v2  ;;  %1123 = vmatmul.mubr.msk.f32.vlgmr.msra.gmra.mxu1 %vm304_vm0, %v280_v4  ;;  %v285_v11 = vld [vmem:[%s1423_s23 + $0x30] sm:$0xff]  ;;  %v286_v12 = vld [vmem:[%s1423_s23 + $0x38] sm:$0xff]  ;;  %v287_v13 = vld [vmem:[%s1423_s23 + $0x40] sm:$0xff]  ;;  %s1262_s21 = scalar_lea.vmem %s1261_s28, 256  ;;  %p1263_p0 = scmp.lt.s32.totalorder %s943_s14, %s1261_s28 }
  0x19   : > { %1125 = vmatprep.mubr.msk.f32.mxu1 %vm304_vm0, %v281_v5  ;;  %1147 = vmatpush3.msra.mxu1 %v549_v2  ;;  %v288_v14 = vld [vmem:[%s1423_s23 + $0x48] sm:$0xff]  ;;  %v289_v15 = vld [vmem:[%s1423_s23 + $0x50] sm:$0xff]  ;;  %v290_v16 = vld [vmem:[%s1423_s23 + $0x58] sm:$0xff]  ;;  %p1264_p1 = scmp.lt.s32.totalorder %s1262_s21, %s1256_s19 }
  0x1a   : > { %1148 = vmatprep.subr.mxu1 %v548_v6  ;;  %v291_v17 = vld [vmem:[%s1423_s23 + $0x60] sm:$0xff]  ;;  %v292_v18 = vld [vmem:[%s1423_s23 + $0x68] sm:$0xff]  ;;  %v293_v19 = vld [vmem:[%s1423_s23 + $0x70] sm:$0xff] }
  0x1b   : > { %1149 = vmatpush3.msra.mxu1 %v548_v6  ;;  %v294_v20 = vld [vmem:[%s1423_s23 + $0x78] sm:$0xff]  ;;  %p1265_p2 = por %p1264_p1, %p1263_p0 }
  0x1c   : > { %1126 = vmatmul.mubr.msk.f32.gmra.mxu1 %vm304_vm0, %v282_v7  ;;  %1150 = vmatprep.subr.mxu1 %v547_v8 }
  0x1d   : > { %1128 = vmatprep.mubr.msk.f32.mxu1 %vm304_vm0, %v283_v9  ;;  %1151 = vmatpush3.msra.mxu1 %v547_v8  ;;  %p1266_p3 = pnand %p1265_p2, %p1259_p13 }
  0x1e   : > { %1152 = vmatprep.subr.mxu1 %v546_v21 }
  0x1f   : > { %1153 = vmatpush3.msra.mxu1 %v546_v21 }
  0x20   : > { %1129 = vmatmul.mubr.msk.f32.gmra.mxu1 %vm304_vm0, %v284_v10 }
  0x21   : > { %1131 = vmatprep.mubr.msk.f32.mxu1 %vm304_vm0, %v285_v11 }
  0x24   : > { %1132 = vmatmul.mubr.msk.f32.gmra.mxu1 %vm304_vm0, %v286_v12 }
  0x25   : > { %1134 = vmatprep.mubr.msk.f32.mxu1 %vm304_vm0, %v287_v13 }
  0x28   : > { %1135 = vmatmul.mubr.msk.f32.gmra.mxu1 %vm304_vm0, %v288_v14 }
  0x29   : > { %1137 = vmatprep.mubr.msk.f32.mxu1 %vm304_vm0, %v289_v15 }
  0x2c   : > { %1138 = vmatmul.mubr.msk.f32.gmra.mxu1 %vm304_vm0, %v290_v16 }
  0x2d   : > { %1140 = vmatprep.mubr.msk.f32.mxu1 %vm304_vm0, %v291_v17 }
  0x30   : > { %1141 = vmatmul.mubr.msk.f32.gmra.mxu1 %vm304_vm0, %v292_v18 }
  0x31   : > { %1143 = vmatprep.mubr.msk.f32.mxu1 %vm304_vm0, %v293_v19 }
  0x34   : > { %1144 = vmatmul.mubr.msk.f32.gmra.mxu1 %vm304_vm0, %v294_v20 }
  0xd8   : > { %v1124_v23 = vpop.f32.mrf.mxu1 }
  0xd9   : > { %v425_v24 = vadd.f32 %v1124_v23, %v1469_v22 }
  0xda   : > { %v419_v25 = vpop.f32.mrf.mxu1 }
  0xdb   : > { %v420_v26 = vadd.f32 %v1469_v22, %v419_v25  ;;  %v515_v27 = vmul.f32 0.01, %v425_v24  ;;  %vm499_vm2 = vcmp.gt.f32.partialorder %v425_v24, 0.0  ;;  %v1320_v25 = vmov 0  }
  0xdc   : > { %v1127_v28 = vpop.f32.mrf.mxu1  ;;  %1255 = vset.pattern.permute.xlu0 %v1320_v25 }
  0xdd   : > { %vm498_vm3 = vcmp.gt.f32.partialorder %v420_v26, 0.0  ;;  %v514_v29 = vmul.f32 0.01, %v420_v26  ;;  %v435_v30 = vadd.f32 %v1127_v28, %v1469_v22  ;;  %v531_v34 = vsel %vm499_vm2, %v425_v24, %v515_v27 }
  0xde   : > { %v429_v31 = vpop.f32.mrf.mxu1  ;;  %v1318_v24 = vmov 0.0  }
  0xdf   : > { %v430_v32 = vadd.f32 %v1469_v22, %v429_v31  ;;  %v530_v33 = vsel %vm498_vm3, %v420_v26, %v514_v29  ;;  %v517_v35 = vmul.f32 0.01, %v435_v30  ;;  %vm501_vm4 = vcmp.gt.f32.partialorder %v435_v30, 0.0  ;;  %1178 = vmatprep.subr.mxu0 %v1318_v24 }
  0xe0   : > { %v1130_v36 = vpop.f32.mrf.mxu1  ;;  %1154 = vmatprep.mubr.msk.f32.mxu1 %vm557_vm1, %v530_v33  ;;  %vm1319_vm3 = vmmov 0  }
  0xe1   : > { %vm500_vm5 = vcmp.gt.f32.partialorder %v430_v32, 0.0  ;;  %v516_v37 = vmul.f32 0.01, %v430_v32  ;;  %v445_v38 = vadd.f32 %v1130_v36, %v1469_v22  ;;  %1155 = vmatmul.mubr.msk.f32.vlgmr.msra.gmra.mxu1 %vm557_vm1, %v531_v34  ;;  %v533_v44 = vsel %vm501_vm4, %v435_v30, %v517_v35  ;;  %1210 = vmatprep.mubr.msk.f32.mxu0 %vm1319_vm3, %v1318_v24 }
  0xe2   : > { %v439_v39 = vpop.f32.mrf.mxu1 }
  0xe3   : > { %v440_v40 = vadd.f32 %v1469_v22, %v439_v39  ;;  %v532_v41 = vsel %vm500_vm5, %v430_v32, %v516_v37  ;;  %v519_v42 = vmul.f32 0.01, %v445_v38  ;;  %vm503_vm6 = vcmp.gt.f32.partialorder %v445_v38, 0.0 }
  0xe4   : > { %v1133_v43 = vpop.f32.mrf.mxu1  ;;  %1157 = vmatprep.mubr.msk.f32.mxu1 %vm557_vm1, %v532_v41 }
  0xe5   : > { %vm502_vm7 = vcmp.gt.f32.partialorder %v440_v40, 0.0  ;;  %v518_v45 = vmul.f32 0.01, %v440_v40  ;;  %v455_v46 = vadd.f32 %v1133_v43, %v1469_v22  ;;  %1158 = vmatmul.mubr.msk.f32.gmra.mxu1 %vm557_vm1, %v533_v44  ;;  %v535_v52 = vsel %vm503_vm6, %v445_v38, %v519_v42 }
  0xe6   : > { %v449_v47 = vpop.f32.mrf.mxu1 }
  0xe7   : > { %v450_v48 = vadd.f32 %v1469_v22, %v449_v47  ;;  %v534_v49 = vsel %vm502_vm7, %v440_v40, %v518_v45  ;;  %v521_v50 = vmul.f32 0.01, %v455_v46  ;;  %vm505_vm8 = vcmp.gt.f32.partialorder %v455_v46, 0.0  ;;  %v1523_v40 = vld [vmem:[%s1626_s4] ss:$0 sm:$0xff] }
  0xe8   : > { %v1136_v51 = vpop.f32.mrf.mxu1  ;;  %1160 = vmatprep.mubr.msk.f32.mxu1 %vm557_vm1, %v534_v49 }
  0xe9   : > { %vm504_vm9 = vcmp.gt.f32.partialorder %v450_v48, 0.0  ;;  %v520_v53 = vmul.f32 0.01, %v450_v48  ;;  %v465_v54 = vadd.f32 %v1136_v51, %v1469_v22  ;;  %1161 = vmatmul.mubr.msk.f32.gmra.mxu1 %vm557_vm1, %v535_v52  ;;  %v537_v60 = vsel %vm505_vm8, %v455_v46, %v521_v50 }
  0xea   : > { %v459_v55 = vpop.f32.mrf.mxu1 }
  0xeb   : > { %v460_v56 = vadd.f32 %v1469_v22, %v459_v55  ;;  %v536_v57 = vsel %vm504_vm9, %v450_v48, %v520_v53  ;;  %v523_v58 = vmul.f32 0.01, %v465_v54  ;;  %vm507_vm10 = vcmp.gt.f32.partialorder %v465_v54, 0.0 }
  0xec   : > { %v1139_v59 = vpop.f32.mrf.mxu1  ;;  %1163 = vmatprep.mubr.msk.f32.mxu1 %vm557_vm1, %v536_v57 }
  0xed   : > { %vm506_vm11 = vcmp.gt.f32.partialorder %v460_v56, 0.0  ;;  %v522_v61 = vmul.f32 0.01, %v460_v56  ;;  %v475_v62 = vadd.f32 %v1139_v59, %v1469_v22  ;;  %1164 = vmatmul.mubr.msk.f32.gmra.mxu1 %vm557_vm1, %v537_v60  ;;  %v539_v4 = vsel %vm507_vm10, %v465_v54, %v523_v58 }
  0xee   : > { %v469_v63 = vpop.f32.mrf.mxu1 }
  0xef   : > { %v470_v0 = vadd.f32 %v1469_v22, %v469_v63  ;;  %v538_v1 = vsel %vm506_vm11, %v460_v56, %v522_v61  ;;  %v525_v2 = vmul.f32 0.01, %v475_v62  ;;  %vm509_vm12 = vcmp.gt.f32.partialorder %v475_v62, 0.0 }
  0xf0   : > { %v1142_v3 = vpop.f32.mrf.mxu1  ;;  %1166 = vmatprep.mubr.msk.f32.mxu1 %vm557_vm1, %v538_v1 }
  0xf1   : > { %vm508_vm13 = vcmp.gt.f32.partialorder %v470_v0, 0.0  ;;  %v524_v5 = vmul.f32 0.01, %v470_v0  ;;  %v485_v6 = vadd.f32 %v1142_v3, %v1469_v22  ;;  %1167 = vmatmul.mubr.msk.f32.gmra.mxu1 %vm557_vm1, %v539_v4  ;;  %v541_v12 = vsel %vm509_vm12, %v475_v62, %v525_v2 }
  0xf2   : > { %v479_v7 = vpop.f32.mrf.mxu1 }
  0xf3   : > { %v480_v8 = vadd.f32 %v1469_v22, %v479_v7  ;;  %v540_v9 = vsel %vm508_vm13, %v470_v0, %v524_v5  ;;  %v527_v10 = vmul.f32 0.01, %v485_v6  ;;  %vm511_vm14 = vcmp.gt.f32.partialorder %v485_v6, 0.0 }
  0xf4   : > { %v1145_v11 = vpop.f32.mrf.mxu1  ;;  %1169 = vmatprep.mubr.msk.f32.mxu1 %vm557_vm1, %v540_v9 }
  0xf5   : > { %vm510_vm15 = vcmp.gt.f32.partialorder %v480_v8, 0.0  ;;  %v526_v13 = vmul.f32 0.01, %v480_v8  ;;  %v495_v14 = vadd.f32 %v1145_v11, %v1469_v22  ;;  %1170 = vmatmul.mubr.msk.f32.gmra.mxu1 %vm557_vm1, %v541_v12  ;;  %v543_v19 = vsel %vm511_vm14, %v485_v6, %v527_v10 }
  0xf6   : > { %v489_v15 = vpop.f32.mrf.mxu1 }
  0xf7   : > { %v490_v16 = vadd.f32 %v1469_v22, %v489_v15  ;;  %v542_v17 = vsel %vm510_vm15, %v480_v8, %v526_v13  ;;  %v529_v18 = vmul.f32 0.01, %v495_v14  ;;  %vm513_vm0 = vcmp.gt.f32.partialorder %v495_v14, 0.0  ;;  %v800_v22 = vld [vmem:[%s1628_s6] sm:$0xff] }
  0xf8   : > { %1172 = vmatprep.mubr.msk.f32.mxu1 %vm557_vm1, %v542_v17  ;;  %803 = vperm.xlu0 %1255, %v800_v22  }
  0xf9   : > { %vm512_vm2 = vcmp.gt.f32.partialorder %v490_v16, 0.0  ;;  %v528_v20 = vmul.f32 0.01, %v490_v16  ;;  %1173 = vmatmul.mubr.msk.f32.gmra.mxu1 %vm557_vm1, %v543_v19  ;;  %v545_v23 = vsel %vm513_vm0, %v495_v14, %v529_v18 }
  0xfb   : > { %v544_v21 = vsel %vm512_vm2, %v490_v16, %v528_v20 }
  0xfc   : > { %1175 = vmatprep.mubr.msk.f32.mxu1 %vm557_vm1, %v544_v21 }
  0xfd   : > { %1176 = vmatmul.mubr.msk.f32.gmra.mxu1 %vm557_vm1, %v545_v23 }
 0x1a1   : > { %v1508_v26 = vpop.f32.mrf.mxu1 }
 0x1a2   : > { %v678_v18 = vadd.f32 %v1508_v26, %v1523_v40 }
 0x1a3   : > { %v1510_v27 = vpop.f32.mrf.mxu1 }
 0x1a4   : > { %v768_v21 = vmul.f32 0.01, %v678_v18  ;;  %v673_v23 = vadd.f32 %v1523_v40, %v1510_v27  ;;  %vm752_vm3 = vcmp.gt.f32.partialorder %v678_v18, 0.0  ;;  %v799_v27 = vld [vmem:[%s1627_s5] sm:$0xff] }
 0x1a5   : > { %v1512_v28 = vpop.f32.mrf.mxu1 }
 0x1a6   : > { %v688_v12 = vadd.f32 %v1512_v28, %v1523_v40  ;;  %v767_v25 = vmul.f32 0.01, %v673_v23  ;;  %v784_v26 = vsel %vm752_vm3, %v678_v18, %v768_v21 }
 0x1a7   : > { %v1514_v29 = vpop.f32.mrf.mxu1 }
 0x1a8   : > { %v770_v15 = vmul.f32 0.01, %v688_v12  ;;  %v683_v16 = vadd.f32 %v1523_v40, %v1514_v29  ;;  %vm754_vm0 = vcmp.gt.f32.partialorder %v688_v12, 0.0  ;;  %v804_v29 = vpop.permute.xlu0 %803 }
 0x1a9   : > { %v1516_v30 = vpop.f32.mrf.mxu1 }
 0x1aa   : > { %v698_v6 = vadd.f32 %v1516_v30, %v1523_v40  ;;  %v769_v19 = vmul.f32 0.01, %v683_v16  ;;  %v786_v20 = vsel %vm754_vm0, %v688_v12, %v770_v15  ;;  %vm753_vm2 = vcmp.gt.f32.partialorder %v683_v16, 0.0 }
 0x1ab   : > { %v1518_v31 = vpop.f32.mrf.mxu1 }
 0x1ac   : > { %v772_v9 = vmul.f32 0.01, %v698_v6  ;;  %v693_v10 = vadd.f32 %v1523_v40, %v1518_v31  ;;  %vm756_vm14 = vcmp.gt.f32.partialorder %v698_v6, 0.0  ;;  %v785_v22 = vsel %vm753_vm2, %v683_v16, %v769_v19 }
 0x1ad   : > { %v1165_v32 = vpop.f32.mrf.mxu1 }
 0x1ae   : > { %v708_v0 = vadd.f32 %v1165_v32, %v1523_v40  ;;  %v771_v13 = vmul.f32 0.01, %v693_v10  ;;  %v788_v14 = vsel %vm756_vm14, %v698_v6, %v772_v9  ;;  %vm755_vm15 = vcmp.gt.f32.partialorder %v693_v10, 0.0 }
 0x1af   : > { %v702_v33 = vpop.f32.mrf.mxu1 }
 0x1b0   : > { %v774_v3 = vmul.f32 0.01, %v708_v0  ;;  %v703_v4 = vadd.f32 %v1523_v40, %v702_v33  ;;  %vm758_vm12 = vcmp.gt.f32.partialorder %v708_v0, 0.0  ;;  %v787_v17 = vsel %vm755_vm15, %v693_v10, %v771_v13 }
 0x1b1   : > { %v1168_v34 = vpop.f32.mrf.mxu1 }
 0x1b2   : > { %v718_v58 = vadd.f32 %v1168_v34, %v1523_v40  ;;  %v773_v7 = vmul.f32 0.01, %v703_v4  ;;  %v790_v8 = vsel %vm758_vm12, %v708_v0, %v774_v3  ;;  %vm757_vm13 = vcmp.gt.f32.partialorder %v703_v4, 0.0 }
 0x1b3   : > { %v712_v35 = vpop.f32.mrf.mxu1 }
 0x1b4   : > { %v776_v61 = vmul.f32 0.01, %v718_v58  ;;  %v713_v62 = vadd.f32 %v1523_v40, %v712_v35  ;;  %vm760_vm10 = vcmp.gt.f32.partialorder %v718_v58, 0.0  ;;  %v789_v11 = vsel %vm757_vm13, %v703_v4, %v773_v7 }
 0x1b5   : > { %v1171_v36 = vpop.f32.mrf.mxu1 }
 0x1b6   : > { %v728_v52 = vadd.f32 %v1171_v36, %v1523_v40  ;;  %v775_v1 = vmul.f32 0.01, %v713_v62  ;;  %v792_v2 = vsel %vm760_vm10, %v718_v58, %v776_v61  ;;  %vm759_vm11 = vcmp.gt.f32.partialorder %v713_v62, 0.0 }
 0x1b7   : > { %v722_v37 = vpop.f32.mrf.mxu1 }
 0x1b8   : > { %v778_v55 = vmul.f32 0.01, %v728_v52  ;;  %v723_v56 = vadd.f32 %v1523_v40, %v722_v37  ;;  %vm762_vm8 = vcmp.gt.f32.partialorder %v728_v52, 0.0  ;;  %v791_v5 = vsel %vm759_vm11, %v713_v62, %v775_v1 }
 0x1b9   : > { %v1174_v38 = vpop.f32.mrf.mxu1 }
 0x1ba   : > { %v738_v46 = vadd.f32 %v1174_v38, %v1523_v40  ;;  %v777_v59 = vmul.f32 0.01, %v723_v56  ;;  %v794_v60 = vsel %vm762_vm8, %v728_v52, %v778_v55  ;;  %vm761_vm9 = vcmp.gt.f32.partialorder %v723_v56, 0.0 }
 0x1bb   : > { %v732_v39 = vpop.f32.mrf.mxu1 }
 0x1bc   : > { %v780_v49 = vmul.f32 0.01, %v738_v46  ;;  %v733_v50 = vadd.f32 %v1523_v40, %v732_v39  ;;  %vm764_vm6 = vcmp.gt.f32.partialorder %v738_v46, 0.0  ;;  %v793_v63 = vsel %vm761_vm9, %v723_v56, %v777_v59 }
 0x1bd   : > { %v1177_v41 = vpop.f32.mrf.mxu1 }
 0x1be   : > { %v748_v42 = vadd.f32 %v1177_v41, %v1523_v40  ;;  %v779_v53 = vmul.f32 0.01, %v733_v50  ;;  %v796_v54 = vsel %vm764_vm6, %v738_v46, %v780_v49  ;;  %vm763_vm7 = vcmp.gt.f32.partialorder %v733_v50, 0.0 }
 0x1bf   : > { %v742_v43 = vpop.f32.mrf.mxu1 }
 0x1c0   : > { %v782_v44 = vmul.f32 0.01, %v748_v42  ;;  %v743_v45 = vadd.f32 %v1523_v40, %v742_v43  ;;  %vm766_vm4 = vcmp.gt.f32.partialorder %v748_v42, 0.0  ;;  %v795_v57 = vsel %vm763_vm7, %v733_v50, %v779_v53 }
 0x1c2   : > { %v781_v47 = vmul.f32 0.01, %v743_v45  ;;  %v798_v48 = vsel %vm766_vm4, %v748_v42, %v782_v44  ;;  %vm765_vm5 = vcmp.gt.f32.partialorder %v743_v45, 0.0  ;;  %vm751_vm4 = vcmp.gt.f32.partialorder %v673_v23, 0.0 }
 0x1c3   : > { %1179 = vmatpush3.xpose.msk.msra.mxu0 %vm557_vm1, %v798_v48  ;;  %v783_v28 = vsel %vm751_vm4, %v673_v23, %v767_v25 }
 0x1c4   : > { %1180 = vmatprep.subr.mxu0 %v1318_v24  ;;  %v797_v51 = vsel %vm765_vm5, %v743_v45, %v781_v47 }
 0x1c7   : > { %1181 = vmatpush3.xpose.msk.msra.mxu0 %vm557_vm1, %v797_v51 }
 0x1c8   : > { %1182 = vmatprep.subr.mxu0 %v1318_v24 }
 0x1cb   : > { %1183 = vmatpush3.xpose.msk.msra.mxu0 %vm557_vm1, %v796_v54 }
 0x1cc   : > { %1184 = vmatprep.subr.mxu0 %v1318_v24 }
 0x1cf   : > { %1185 = vmatpush3.xpose.msk.msra.mxu0 %vm557_vm1, %v795_v57 }
 0x1d0   : > { %1186 = vmatprep.subr.mxu0 %v1318_v24 }
 0x1d3   : > { %1187 = vmatpush3.xpose.msk.msra.mxu0 %vm557_vm1, %v794_v60 }
 0x1d4   : > { %1188 = vmatprep.subr.mxu0 %v1318_v24 }
 0x1d7   : > { %1189 = vmatpush3.xpose.msk.msra.mxu0 %vm557_vm1, %v793_v63 }
 0x1d8   : > { %1190 = vmatprep.subr.mxu0 %v1318_v24 }
 0x1db   : > { %1191 = vmatpush3.xpose.msk.msra.mxu0 %vm557_vm1, %v792_v2 }
 0x1dc   : > { %1192 = vmatprep.subr.mxu0 %v1318_v24 }
 0x1df   : > { %1193 = vmatpush3.xpose.msk.msra.mxu0 %vm557_vm1, %v791_v5 }
 0x1e0   : > { %1194 = vmatprep.subr.mxu0 %v1318_v24 }
 0x1e3   : > { %1195 = vmatpush3.xpose.msk.msra.mxu0 %vm557_vm1, %v790_v8 }
 0x1e4   : > { %1196 = vmatprep.subr.mxu0 %v1318_v24 }
 0x1e7   : > { %1197 = vmatpush3.xpose.msk.msra.mxu0 %vm557_vm1, %v789_v11 }
 0x1e8   : > { %1198 = vmatprep.subr.mxu0 %v1318_v24 }
 0x1eb   : > { %1199 = vmatpush3.xpose.msk.msra.mxu0 %vm557_vm1, %v788_v14 }
 0x1ec   : > { %1200 = vmatprep.subr.mxu0 %v1318_v24 }
 0x1ef   : > { %1201 = vmatpush3.xpose.msk.msra.mxu0 %vm557_vm1, %v787_v17 }
 0x1f0   : > { %1202 = vmatprep.subr.mxu0 %v1318_v24 }
 0x1f3   : > { %1203 = vmatpush3.xpose.msk.msra.mxu0 %vm557_vm1, %v786_v20 }
 0x1f4   : > { %1204 = vmatprep.subr.mxu0 %v1318_v24 }
 0x1f7   : > { %1205 = vmatpush3.xpose.msk.msra.mxu0 %vm557_vm1, %v785_v22 }
 0x1f8   : > { %1206 = vmatprep.subr.mxu0 %v1318_v24 }
 0x1fb   : > { %1207 = vmatpush3.xpose.msk.msra.mxu0 %vm557_vm1, %v784_v26 }
 0x1fc   : > { %1208 = vmatprep.subr.mxu0 %v1318_v24 }
 0x1ff   : > { %1209 = vmatpush3.xpose.msk.msra.mxu0 %vm557_vm1, %v783_v28 }
 0x202   : > { %1211 = vmatmul.mubr.msk.f32.vlgmr.msra.gmra.mxu0 %vm557_vm1, %v799_v27 }
 0x2c2   : > { %v923_v30 = vpop.f32.mrf.mxu0 }
 0x2c3   : > { %v924_v31 = vadd.f32 %v923_v30, %v804_v29 }
 0x2c4   : > { %v1212_v24 = vpop.f32.mrf.mxu0 }
 0x2c5   : > { %927 = vst [vmem:[%s272_s13] sm:$0xff] %v924_v31 }
 0x2c6   : > { %1269 = shalt.err (!%p1266_p3)
}
 0x2c7   : > { %s1270_s22 = scalar_lea.hbm %s1587_s17, 128  ;;  %s1274_s8 = scalar_lea.hbm %s1629_s7, 256 }
 0x2c8   : > { %p1271_p4 = scmp.ne.s32.totalorder %s1587_s17, %s1270_s22  ;;  %p1275_p9 = scmp.lt.s32.totalorder %s1587_s17, %s1629_s7 }
 0x2c9   : > { %p1276_p10 = scmp.lt.s32.totalorder %s1274_s8, %s1270_s22 }
 0x2ca   : > { %p1272_p7 = pnand %p1271_p4, %p1400_p5 }
 0x2cb   : > { %p1277_p11 = por %p1276_p10, %p1275_p9 }
 0x2cc   : > { %p1273_p8 = pneg %p1272_p7 }
 0x2ce   : > { %p1278_p12 = pnand %p1277_p11, %p1273_p8 }
 0x2d0   : > { %1281 = shalt.err (!%p1278_p12)
}
 0x2d1   : > { %1213 = dma.vmem_to_hbm [thread:$0]  (%p1400_p5), %s943_s14, 128, %s1587_s17, %s929_s18  }
 0x2d2 PF: > { %p1219_p13 = scmp.ge.s32.totalorder %s1316_s27, 2  ;;  %s954_s15 = sand.u32 1, %s1304_s24  }
 0x2d3   : > { %s955_s16 = scalar_lea.sflag [#allocation3], %s954_s15 }
 0x2d4   : > { %p1216_p0 = pnand %p1219_p13, %p1404_p6 }
 0x2d6   : > { %p1217_p1 = pneg %p1216_p0 }
 0x2d8   : > { %1299 = dma.done.wait (%p1217_p1), %s955_s16, 128  }
 0x2d9   : > { %1301 = vsyncadd (%p1217_p1), %s955_s16, 4294967168  ;;  %p17_p2 = scmp.ge.s32.totalorder %s1387_s30, 4   ;;  %s1632_s24 = smov %s1308_s25 }
 0x2da   : > { %s1633_s25 = smov %s1312_s26  ;;  %s1634_s26 = smov %s1398_s10 }
 0x2db   : > { %s1635_s27 = smov %s1387_s30  ;;  %19 = sbr.rel (!%p17_p2) target bundleno = 3 (0x3), region = 83 }
 0x2e0   :  { %960 = vsyncpa [#allocation3], 1 }
 0x2e1   :  { %962 = vsyncpa [#allocation3 + $0x1], 1 }

</bundles_post_ra>
